<compile_context>
chip_gen: v6e
topology: v6e:2x2x1
jax: 0.10.0
libtpu: 0.0.40
codegen_flags: <defaults>
</compile_context>

<pallas_src>
import math
import jax
import jax.numpy as jnp
from jax.experimental import pallas as pl
from jax.experimental.pallas import tpu as pltpu

KH = KW = 3  # VGG standard 3x3 convolution, padding=1


def conv_relu_pool_kernel(x_ref, w_ref, b_ref, o_ref):
    """Fused Conv3x3(pad=1) + bias + ReLU + MaxPool2x2 for one (image, row-tile).

    x_ref: (1, 4, K, M) bf16  quadrant tap tensor.  Quadrant q = 2*ph + pw holds,
                              for every pooled output pixel (i, j) of this tile,
                              the K = Cin*3*3 input taps of conv output
                              (2i+ph, 2j+pw).  Lane axis = M pooled pixels.
    w_ref: (Cout, K)   bf16   weights, K ordered (ci, kh, kw) (PyTorch OIHW flat)
    b_ref: (Cout, 1)   f32    bias (broadcast over lanes)
    o_ref: (1, Cout, M)       pooled output tile, NCHW-flat, lane-dense minor dim
    """
    wmat = w_ref[...]
    # 4 MXU matmuls (one per pool quadrant), f32 accumulation, combined by max.
    acc = jnp.dot(wmat, x_ref[0, 0], preferred_element_type=jnp.float32)
    for q in range(1, 4):
        acc = jnp.maximum(
            acc, jnp.dot(wmat, x_ref[0, q], preferred_element_type=jnp.float32))
    # max / bias-add / ReLU commute (bias-add and ReLU are monotone), so a single
    # VPU pass on the already-pooled (quarter-size) result suffices.
    acc = jnp.maximum(acc + b_ref[...], 0.0)
    o_ref[0] = acc.astype(o_ref.dtype)


def _round_up(v, m):
    return -(-v // m) * m


def _pick_pooled_tile_rows(N, H2, W2, K, Cout, vmem_budget_bytes=6 * 1024 * 1024):
    """Pooled output rows per grid step (TH2).

    Legal tiles: TH2 == H2 (full extent), or TH2 % 8 == 0, H2 % TH2 == 0 and
    (TH2 * W2) % 128 == 0 (lane-dense blocks).  Picks the largest legal tile
    whose estimated per-step VMEM fits the budget, preferring >= 2 total grid
    steps so both TensorCores get work on v7x.
    """
    kpad = _round_up(K, 16)  # bf16 sublane padding of the K axis

    def step_bytes(th2):
        m = th2 * W2
        x_blk = 4 * kpad * m * 2          # bf16 quadrant tap block
        o_blk = Cout * m * 2              # bf16 output block
        acc = 3 * Cout * m * 4            # live f32 accumulator temporaries
        return 2 * x_blk + 2 * o_blk + acc  # double-buffered in/out + temps

    cands = [H2] + [t for t in range(8, H2, 8)
                    if H2 % t == 0 and (t * W2) % 128 == 0]
    fitting = sorted((c for c in cands if step_bytes(c) <= vmem_budget_bytes),
                     reverse=True)
    if not fitting:
        return min(cands)
    for c in fitting:
        if N * (H2 // c) >= 2:
            return c
    return fitting[0]


def vgg_client_forward(x_nchw, w_oihw, b, *, out_dtype=jnp.bfloat16,
                       pooled_tile_rows=None):
    """VGG_client.features = [Conv3x3(pad=1) -> ReLU -> MaxPool2x2].

    x_nchw: (N, Cin, H, W) float32 (PyTorch NCHW convention)
    w_oihw: (Cout, Cin, 3, 3) float32 (PyTorch OIHW convention)
    b:      (Cout,) float32
    returns (N, Cout, H//2, W//2) in `out_dtype` (NCHW; bf16 by default).
    """
    N, Cin, H, W = x_nchw.shape
    Cout = w_oihw.shape[0]
    assert w_oihw.shape == (Cout, Cin, KH, KW)
    assert H % 2 == 0 and W % 2 == 0
    H2, W2 = H // 2, W // 2
    K = Cin * KH * KW

    TH2 = (pooled_tile_rows if pooled_tile_rows is not None
           else _pick_pooled_tile_rows(N, H2, W2, K, Cout))
    assert TH2 == H2 or (H2 % TH2 == 0 and TH2 % 8 == 0 and (TH2 * W2) % 128 == 0)
    n_tiles = H2 // TH2
    TILE_M = TH2 * W2

    # ---- wrapper-side column building (XLA; fuses with the pad/cast pass) ----
    # taps[n, ci, t=(kh,kw), h, w] = x_pad[n, ci, h+kh, w+kw]
    xb = x_nchw.astype(jnp.bfloat16)
    x_pad = jnp.pad(xb, ((0, 0), (0, 0), (1, 1), (1, 1)))
    taps = jnp.stack([x_pad[:, :, kh:kh + H, kw:kw + W]
                      for kh in range(KH) for kw in range(KW)],
                     axis=2)                                   # (N, Cin, 9, H, W)
    # Pool quadrants (row/col parity): quadrant q = 2*ph + pw.
    quads = jnp.stack([taps[:, :, :, ph::2, pw::2]
                       for ph in range(2) for pw in range(2)],
                      axis=1)                                  # (N, 4, Cin, 9, H2, W2)
    # K order = (ci, kh, kw) -> matches w_oihw.reshape(Cout, Cin*9).
    x_cols = quads.reshape(N, 4, K, H2 * W2)                   # lane axis = pixels

    w2d = w_oihw.reshape(Cout, K).astype(jnp.bfloat16)
    b2 = b.reshape(Cout, 1).astype(jnp.float32)

    out = pl.pallas_call(
        conv_relu_pool_kernel,
        out_shape=jax.ShapeDtypeStruct((N, Cout, H2 * W2), out_dtype),
        grid_spec=pltpu.PrefetchScalarGridSpec(
            num_scalar_prefetch=0,
            grid=(N, n_tiles),
            in_specs=[
                # Quadrant tap tile: lane-dense (minor dim = pooled pixels).
                # Raise pipeline depth (pl.Buffered) here if the DMA ever shows
                # up exposed; default double-buffering hides it at these sizes.
                pl.BlockSpec((1, 4, K, TILE_M), lambda n, t: (n, 0, 0, t)),
                # Weights / bias: constant index_map -> resident in VMEM.
                pl.BlockSpec((Cout, K), lambda n, t: (0, 0)),
                pl.BlockSpec((Cout, 1), lambda n, t: (0, 0)),
            ],
            out_specs=pl.BlockSpec((1, Cout, TILE_M), lambda n, t: (n, 0, t)),
        ),
        compiler_params=pltpu.CompilerParams(
            dimension_semantics=("parallel", "parallel"),
            vmem_limit_bytes=32 * 1024 * 1024),
    )(x_cols, w2d, b2)

    # Minor axis is already (H2*W2) pixels of NCHW -> just split it.
    return out.reshape(N, Cout, H2, W2)


if __name__ == "__main__":
    # Small shapes consistent with the module's forward (NCHW image input).
    N, Cin, H, W = 2, 3, 16, 16
    Cout = 32

    key = jax.random.PRNGKey(0)
    kw_key, kx_key = jax.random.split(key)

    # Deterministic parameter init mirroring VGG_client.__init__:
    #   n = kh * kw * out_channels ; weight ~ N(0, sqrt(2/n)) ; bias = 0
    fan = KH * KW * Cout
    w = jax.random.normal(kw_key, (Cout, Cin, KH, KW), jnp.float32) \
        * math.sqrt(2.0 / fan)
    b = jnp.zeros((Cout,), jnp.float32)

    x = jax.random.normal(kx_key, (N, Cin, H, W), jnp.float32)

    out = vgg_client_forward(x, w, b)
    out = jax.block_until_ready(out)

    # Reference on the same bf16-rounded operands (the kernel does bf16 MXU
    # matmuls with f32 accumulation and a bf16 output store), so only
    # accumulation/output-rounding noise remains.
    xq = x.astype(jnp.bfloat16).astype(jnp.float32)
    wq = w.astype(jnp.bfloat16).astype(jnp.float32)
    ref = jax.lax.conv_general_dilated(
        xq, wq, window_strides=(1, 1), padding=((1, 1), (1, 1)),
        dimension_numbers=("NCHW", "OIHW", "NCHW"))
    ref = jnp.maximum(ref + b[None, :, None, None], 0.0)
    ref = jax.lax.reduce_window(ref, -jnp.inf, jax.lax.max,
                                (1, 1, 2, 2), (1, 1, 2, 2), "VALID")

    assert out.shape == (N, Cout, H // 2, W // 2)
    err = float(jnp.max(jnp.abs(out.astype(jnp.float32) - ref)))
    assert err < 3e-2, err
    print("KERNEL_OK")
</pallas_src>

<mosaic_0001>
module attributes {stable_mosaic.version = 11 : i64} {
  func.func @conv_relu_pool_kernel(%arg0: i32, %arg1: i32, %arg2: memref<1x4x27x64xbf16, #tpu.memory_space<vmem>>, %arg3: memref<32x27xbf16, #tpu.memory_space<vmem>>, %arg4: memref<32x1xf32, #tpu.memory_space<vmem>>, %arg5: memref<1x32x64xbf16, #tpu.memory_space<vmem>>) attributes {dimension_semantics = [#tpu.dimension_semantics<parallel>, #tpu.dimension_semantics<parallel>], iteration_bounds = array<i64: 2, 1>, scalar_prefetch = 0 : i64, scratch_operands = 0 : i64, tpu.core_type = #tpu.core_type<tc>, window_params = [{transform_indices = @transform_0, window_bounds = array<i64: 1, 4, 27, 64>}, {pipeline_mode = #tpu.pipeline_mode<synchronous>, transform_indices = @transform_1, window_bounds = array<i64: 32, 27>}, {pipeline_mode = #tpu.pipeline_mode<synchronous>, transform_indices = @transform_2, window_bounds = array<i64: 32, 1>}, {transform_indices = @transform_3, window_bounds = array<i64: 1, 32, 64>}]} {
    %c0 = arith.constant 0 : index
    %c0_0 = arith.constant 0 : index
    %0 = vector.load %arg3[%c0, %c0_0] : memref<32x27xbf16, #tpu.memory_space<vmem>>, vector<32x27xbf16>
    %c0_1 = arith.constant 0 : index
    %c0_2 = arith.constant 0 : index
    %c0_3 = arith.constant 0 : index
    %c0_4 = arith.constant 0 : index
    %1 = vector.load %arg2[%c0_1, %c0_2, %c0_3, %c0_4] : memref<1x4x27x64xbf16, #tpu.memory_space<vmem>>, vector<1x1x27x64xbf16>
    %2 = vector.shape_cast %1 : vector<1x1x27x64xbf16> to vector<27x64xbf16>
    %cst = arith.constant dense<0.000000e+00> : vector<32x64xf32>
    %3 = tpu.matmul %0, %2, %cst {dimension_numbers = #tpu.dot_dimension_numbers<[1], [0], [0], [1], [0, 0, 1, 1], [], []>} : vector<32x27xbf16>, vector<27x64xbf16>, vector<32x64xf32> -> vector<32x64xf32>
    %c0_5 = arith.constant 0 : index
    %c1 = arith.constant 1 : index
    %c0_6 = arith.constant 0 : index
    %c0_7 = arith.constant 0 : index
    %4 = vector.load %arg2[%c0_5, %c1, %c0_6, %c0_7] : memref<1x4x27x64xbf16, #tpu.memory_space<vmem>>, vector<1x1x27x64xbf16>
    %5 = vector.shape_cast %4 : vector<1x1x27x64xbf16> to vector<27x64xbf16>
    %cst_8 = arith.constant dense<0.000000e+00> : vector<32x64xf32>
    %6 = tpu.matmul %0, %5, %cst_8 {dimension_numbers = #tpu.dot_dimension_numbers<[1], [0], [0], [1], [0, 0, 1, 1], [], []>} : vector<32x27xbf16>, vector<27x64xbf16>, vector<32x64xf32> -> vector<32x64xf32>
    %7 = arith.maximumf %3, %6 : vector<32x64xf32>
    %c0_9 = arith.constant 0 : index
    %c2 = arith.constant 2 : index
    %c0_10 = arith.constant 0 : index
    %c0_11 = arith.constant 0 : index
    %8 = vector.load %arg2[%c0_9, %c2, %c0_10, %c0_11] : memref<1x4x27x64xbf16, #tpu.memory_space<vmem>>, vector<1x1x27x64xbf16>
    %9 = vector.shape_cast %8 : vector<1x1x27x64xbf16> to vector<27x64xbf16>
    %cst_12 = arith.constant dense<0.000000e+00> : vector<32x64xf32>
    %10 = tpu.matmul %0, %9, %cst_12 {dimension_numbers = #tpu.dot_dimension_numbers<[1], [0], [0], [1], [0, 0, 1, 1], [], []>} : vector<32x27xbf16>, vector<27x64xbf16>, vector<32x64xf32> -> vector<32x64xf32>
    %11 = arith.maximumf %7, %10 : vector<32x64xf32>
    %c0_13 = arith.constant 0 : index
    %c3 = arith.constant 3 : index
    %c0_14 = arith.constant 0 : index
    %c0_15 = arith.constant 0 : index
    %12 = vector.load %arg2[%c0_13, %c3, %c0_14, %c0_15] : memref<1x4x27x64xbf16, #tpu.memory_space<vmem>>, vector<1x1x27x64xbf16>
    %13 = vector.shape_cast %12 : vector<1x1x27x64xbf16> to vector<27x64xbf16>
    %cst_16 = arith.constant dense<0.000000e+00> : vector<32x64xf32>
    %14 = tpu.matmul %0, %13, %cst_16 {dimension_numbers = #tpu.dot_dimension_numbers<[1], [0], [0], [1], [0, 0, 1, 1], [], []>} : vector<32x27xbf16>, vector<27x64xbf16>, vector<32x64xf32> -> vector<32x64xf32>
    %15 = arith.maximumf %11, %14 : vector<32x64xf32>
    %c0_17 = arith.constant 0 : index
    %c0_18 = arith.constant 0 : index
    %16 = vector.load %arg4[%c0_17, %c0_18] : memref<32x1xf32, #tpu.memory_space<vmem>>, vector<32x1xf32>
    %17 = vector.broadcast %16 : vector<32x1xf32> to vector<32x64xf32>
    %18 = arith.addf %15, %17 : vector<32x64xf32>
    %cst_19 = arith.constant 0.000000e+00 : f32
    %19 = vector.broadcast %cst_19 : f32 to vector<32x64xf32>
    %20 = arith.maximumf %18, %19 : vector<32x64xf32>
    %21 = arith.truncf %20 : vector<32x64xf32> to vector<32x64xbf16>
    %c0_20 = arith.constant 0 : index
    %c0_21 = arith.constant 0 : index
    %c0_22 = arith.constant 0 : index
    %22 = vector.load %arg5[%c0_20, %c0_21, %c0_22] : memref<1x32x64xbf16, #tpu.memory_space<vmem>>, vector<1x32x64xbf16>
    %23 = vector.shape_cast %22 : vector<1x32x64xbf16> to vector<32x64xbf16>
    %24 = vector.shape_cast %21 : vector<32x64xbf16> to vector<1x32x64xbf16>
    tpu.vector_store %arg5[%c0_20, %c0_21, %c0_22], %24 {strides = array<i32>} : memref<1x32x64xbf16, #tpu.memory_space<vmem>>, vector<1x32x64xbf16>,
    return
  }
  func.func @transform_0(%arg0: i32, %arg1: i32) -> (i32, i32, i32, i32) {
    %c0_i32 = arith.constant 0 : i32
    %c0_i32_0 = arith.constant 0 : i32
    %c0_i32_1 = arith.constant 0 : i32
    return %arg0, %c0_i32, %c0_i32_0, %arg1 : i32, i32, i32, i32
  }
  func.func @transform_1(%arg0: i32, %arg1: i32) -> (i32, i32) {
    %c0_i32 = arith.constant 0 : i32
    %c0_i32_0 = arith.constant 0 : i32
    %c0_i32_1 = arith.constant 0 : i32
    return %c0_i32, %c0_i32_0 : i32, i32
  }
  func.func @transform_2(%arg0: i32, %arg1: i32) -> (i32, i32) {
    %c0_i32 = arith.constant 0 : i32
    %c0_i32_0 = arith.constant 0 : i32
    %c0_i32_1 = arith.constant 0 : i32
    return %c0_i32, %c0_i32_0 : i32, i32
  }
  func.func @transform_3(%arg0: i32, %arg1: i32) -> (i32, i32, i32) {
    %c0_i32 = arith.constant 0 : i32
    %c0_i32_0 = arith.constant 0 : i32
    return %arg0, %c0_i32, %arg1 : i32, i32, i32
  }
}

</mosaic_0001>

<bundles_post_ra>
// kernel: tpu_custom_call.1
= control target key start
LH: loop header
LB: loop body
LE: loop exit
PB: predicated region body
PF: predicated region fallthrough
CT: control target
= control target key end

     0   :  { %8 = vsyncpa [#allocation3], 0  ;;  %s1072_s0 = inlined_call_operand.vmem [shape: bf16[2,4,27,64], index: 0, kind: input, shape index: {}]   ;;  %s1073_s1 = inlined_call_operand.vmem [shape: bf16[32,27], index: 1, kind: input, shape index: {}]   ;;  %s1074_s2 = inlined_call_operand.vmem [shape: f32[32,1], index: 2, kind: input, shape index: {}]   ;;  %s1075_s3 = inlined_call_operand.hbm [shape: bf16[2,32,64], index: 3, kind: output, shape index: {}]  }
   0x1   :  { %10 = vsyncpa [#allocation3 + $0x1], 0  ;;  %s924_s12 = smov 0   ;;  %s926_s13 = smov 0  }
   0x2   :  { %s928_s14 = smov 0   ;;  %s930_s15 = smov 0  }
   0x3   :  { %s932_s16 = smov 0   ;;  %s934_s17 = smov 0  }
   0x4 LB: > { %s649_s18 = sadd.s32 4294967295, %s897_s17   ;;  %s650_s19 = sadd.s32 4294967294, %s897_s17   ;;  %s897_s17 = sphi %s934_s17, %s16_s17   ;;  %s893_s16 = sphi %s932_s16, %s1082_s16   ;;  %s889_s15 = sphi %s930_s15, %s1081_s15   ;;  %s885_s14 = sphi %s928_s14, %s1080_s14   ;;  %s881_s13 = sphi %s926_s13, %s1079_s13   ;;  %s877_s12 = sphi %s924_s12, %s1078_s12  }
   0x5   : > { %s28_s20 = sadd.s32 1, %s893_s16  ;;  %s107_s21 = sadd.s32 1, %s885_s14 }
   0x6   : > { %p30_p0 = scmp.ge.s32.totalorder %s28_s20, 2  ;;  %p117_p1 = scmp.ne.s32.totalorder %s885_s14, %s881_s13 }
   0x7   : > { %p118_p2 = scmp.eq.s32.totalorder %s649_s18, 1  ;;  %p123_p3 = scmp.ne.s32.totalorder %s881_s13, %s877_s12 }
   0x8   : > { %s1084_s20 = smov (%p30_p0, %s28_s20), 0  ;;  %p124_p5 = scmp.eq.s32.totalorder %s650_s19, 1 }
   0x9   : > { %p964_p4 = por %p118_p2, %p117_p1  ;;  %s102_s23 = ssub.s32 %s893_s16, %s1084_s20 }
   0xa   : > { %p653_p6 = scmp.ge.s32.totalorder %s897_s17, 1  ;;  %p105_p7 = scmp.eq.s32.totalorder %s102_s23, 0 }
   0xb   : > { %p971_p8 = por %p124_p5, %p123_p3  ;;  %p159_p9 = scmp.lt.s32.totalorder %s897_s17, 3 }
   0xc   : > { %s977_s25 = scalar_select %p105_p7, %s885_s14, %s107_s21  }
   0xd   : > { %p160_p10 = pnand %p653_p6, %p159_p9 }
   0xe   : > { %p186_p11 = scmp.lt.s32.totalorder (!%p160_p10), %s889_s15, 1  ;;  %s183_s26 = sand.u32 (!%p160_p10), 1, %s881_s13  }
   0xf   : > { %163 = sbr.rel (%p160_p10) target bundleno = 267 (0x10b), region = 32  ;;  %s654_s27 = sshll.u32 (!%p160_p10), %s183_s26, 4 }
  0x10   : > { %s701_s30 = sshll.u32 (!%p160_p10), %s889_s15, 8  ;;  %s901_s8 = smov (!%p160_p10), [#allocation2]  }
  0x14   : > { %vm231_vm0 = vcmask 1044480   ;;  %vm232_vm1 = vcmask 1045504   ;;  %v815_v0 = vld [vmem:[%s1073_s1] sm:$0xff]   ;;  %vm224_vm2 = vcmask 220160   ;;  %s187_s28 = scalar_select %p186_p11, %s889_s15, 1  ;;  %v899_v1 = vmov 65535  }
  0x15   : > { %v233_v2 = vsel %vm231_vm0, 4294967295, %v899_v1  ;;  %722 = vmatprep.mubr.msk.bf16.mxu0 %vm224_vm2, %v815_v0  ;;  %730 = vmatprep.mubr.msk.bf16.mxu1 %vm224_vm2, %v815_v0  ;;  %v505_v3 = vld [vmem:[%s1074_s2 + $0x10] sm:$0xff]  ;;  %v503_v4 = vld [vmem:[%s1074_s2] sm:$0xff]  ;;  %v900_v5 = vmov 0   ;;  %v506_v7 = vld [vmem:[%s1074_s2 + $0x18] sm:$0xff]  ;;  %vm551_vm3 = vcmask 519168  }
  0x16   : > { %s696_s6 = sshll.u32 %s187_s28, 6  ;;  %810 = vset.pattern.permute.xlu1 %v900_v5  ;;  %809 = vset.pattern.permute.xlu0 %v900_v5  ;;  %v234_v6 = vsel %vm232_vm1, %v233_v2, 0  ;;  %v504_v8 = vld [vmem:[%s1074_s2 + $0x8] sm:$0xff]  ;;  %s185_s28 = scalar_lea.vmem [#allocation2], %s654_s27 }
  0x17   : > { %s193_s9 = scalar_lea.vmem %s1072_s0, %s696_s6  ;;  %519 = vperm.xlu1 %810, %v505_v3   ;;  %509 = vperm.xlu0 %809, %v503_v4   ;;  %v816_v19 = vld [vmem:[%s1073_s1 + $0x8] sm:$0xff]   ;;  %s571_s29 = sshll.u32 %s185_s28, 4  ;;  %s1016_s29 = int_to_ptr.vmem [resolvable:$true] %s571_s29 }
  0x18   : > { %v811_v9 = vld [vmem:[%s193_s9 + $0x8] sm:$0x3f]   ;;  %v812_v10 = vld [vmem:[%s193_s9 + $0x18] sm:$0x3f]   ;;  %v813_v12 = vld [vmem:[%s193_s9] sm:$0xff]   ;;  %s1022_s6 = scalar_lea.hbm %s1075_s3, %s701_s30  ;;  %s1027_s15 = scalar_lea.sflag [#allocation3], %s183_s26 }
  0x19   : > { %v236_v11 = vand.u32 %v811_v9, %v234_v6  ;;  %v304_v13 = vand.u32 %v812_v10, %v234_v6  ;;  %v814_v14 = vld [vmem:[%s193_s9 + $0x10] sm:$0xff]   ;;  %v817_v15 = vld [vmem:[%s193_s9 + $0x28] sm:$0x3f]   ;;  %v818_v16 = vld [vmem:[%s193_s9 + $0x38] sm:$0x3f]   ;;  %s821_s7 = scalar_lea.vmem %s1016_s29, 256 }
  0x1a   : > { %v376_v17 = vand.u32 %v817_v15, %v234_v6  ;;  %v448_v18 = vand.u32 %v818_v16, %v234_v6  ;;  %v819_v20 = vld [vmem:[%s193_s9 + $0x20] sm:$0xff]   ;;  %v820_v21 = vld [vmem:[%s193_s9 + $0x30] sm:$0xff]   ;;  %p822_p12 = scmp.ne.s32.totalorder %s1016_s29, %s821_s7  ;;  %s825_s9 = sshll.u32 %s901_s8, 4  ;;  %s826_s9 = int_to_ptr.vmem [resolvable:$false] %s825_s9 }
  0x1b   : > { %524 = vperm.xlu1 %810, %v506_v7   ;;  %514 = vperm.xlu0 %809, %v504_v8   ;;  %s827_s10 = scalar_lea.vmem %s826_s9, 512  ;;  %p828_p1 = scmp.lt.s32.totalorder %s1016_s29, %s826_s9 }
  0x1c   : > { %718 = vmatprep.subr.bf16.mxu0 %v236_v11  ;;  %726 = vmatprep.subr.bf16.mxu1 %v304_v13  ;;  %p823_p13 = pnand %p822_p12, %p964_p4  ;;  %p829_p2 = scmp.lt.s32.totalorder %s827_s10, %s821_s7 }
  0x1d   : > { %719 = vmatpush3.bf16.msra.mxu0 %v236_v11  ;;  %727 = vmatpush3.bf16.msra.mxu1 %v304_v13 }
  0x1e   : > { %720 = vmatprep.subr.bf16.mxu0 %v813_v12  ;;  %728 = vmatprep.subr.bf16.mxu1 %v814_v14  ;;  %p824_p0 = pneg %p823_p13  ;;  %p830_p3 = por %p829_p2, %p828_p1 }
  0x20   : > { %p831_p5 = pnand %p830_p3, %p824_p0 }
  0x21   : > { %721 = vmatpush3.bf16.msra.mxu0 %v813_v12  ;;  %729 = vmatpush3.bf16.msra.mxu1 %v814_v14 }
  0x22   : > { %734 = vmatprep.subr.bf16.mxu0 %v376_v17  ;;  %742 = vmatprep.subr.bf16.mxu1 %v448_v18 }
  0x24   : > { %723 = vmatmul.mubr.msk.bf16.vlgmr.msra.gmra.mxu0 %vm224_vm2, %v816_v19  ;;  %731 = vmatmul.mubr.msk.bf16.vlgmr.msra.gmra.mxu1 %vm224_vm2, %v816_v19 }
  0x25   : > { %735 = vmatpush3.bf16.msra.mxu0 %v376_v17  ;;  %743 = vmatpush3.bf16.msra.mxu1 %v448_v18 }
  0x26   : > { %736 = vmatprep.subr.bf16.mxu0 %v819_v20  ;;  %744 = vmatprep.subr.bf16.mxu1 %v820_v21 }
  0x27   : > { %738 = vmatprep.mubr.msk.bf16.mxu0 %vm224_vm2, %v815_v0  ;;  %746 = vmatprep.mubr.msk.bf16.mxu1 %vm224_vm2, %v815_v0 }
  0x29   : > { %737 = vmatpush3.bf16.msra.mxu0 %v819_v20  ;;  %745 = vmatpush3.bf16.msra.mxu1 %v820_v21 }
  0x2c   : > { %739 = vmatmul.mubr.msk.bf16.vlgmr.msra.gmra.mxu0 %vm224_vm2, %v816_v19  ;;  %747 = vmatmul.mubr.msk.bf16.vlgmr.msra.gmra.mxu1 %vm224_vm2, %v816_v19 }
  0x92   : > { %v520_v36 = vpop.permute.xlu1 %519  ;;  %v510_v41 = vpop.permute.xlu0 %509 }
  0x96   : > { %v525_v54 = vpop.permute.xlu1 %524  ;;  %v515_v59 = vpop.permute.xlu0 %514 }
  0xe4   : > { %v724_v22 = vpop.f32.mrf.mxu0  ;;  %v732_v23 = vpop.f32.mrf.mxu1 }
  0xe5   : > { %v357_v29 = vmax.f32 %v724_v22, %v732_v23 }
  0xe6   : > { %v272_v24 = vpop.f32.mrf.mxu0  ;;  %v340_v25 = vpop.f32.mrf.mxu1 }
  0xe7   : > { %v355_v32 = vmax.f32 %v272_v24, %v340_v25 }
  0xe8   : > { %v725_v26 = vpop.f32.mrf.mxu0  ;;  %v733_v27 = vpop.f32.mrf.mxu1 }
  0xe9   : > { %v358_v37 = vmax.f32 %v725_v26, %v733_v27 }
  0xea   : > { %v275_v28 = vpop.f32.mrf.mxu0  ;;  %v343_v30 = vpop.f32.mrf.mxu1 }
  0xeb   : > { %v356_v43 = vmax.f32 %v275_v28, %v343_v30 }
  0xec   : > { %v740_v31 = vpop.f32.mrf.mxu0  ;;  %v748_v34 = vpop.f32.mrf.mxu1 }
  0xed   : > { %v429_v33 = vmax.f32 %v357_v29, %v740_v31 }
  0xee   : > { %v412_v35 = vpop.f32.mrf.mxu0  ;;  %v484_v40 = vpop.f32.mrf.mxu1 }
  0xef   : > { %v501_v38 = vmax.f32 %v429_v33, %v748_v34  ;;  %v427_v39 = vmax.f32 %v355_v32, %v412_v35 }
  0xf0   : > { %v741_v42 = vpop.f32.mrf.mxu0  ;;  %v749_v47 = vpop.f32.mrf.mxu1 }
  0xf1   : > { %v499_v44 = vmax.f32 %v427_v39, %v484_v40  ;;  %v529_v45 = vadd.f32 %v520_v36, %v501_v38  ;;  %v430_v46 = vmax.f32 %v358_v37, %v741_v42 }
  0xf2   : > { %v415_v48 = vpop.f32.mrf.mxu0  ;;  %v487_v53 = vpop.f32.mrf.mxu1 }
  0xf3   : > { %v533_v49 = vmax.f32 %v529_v45, 0.0  ;;  %v527_v50 = vadd.f32 %v510_v41, %v499_v44  ;;  %v502_v51 = vmax.f32 %v430_v46, %v749_v47  ;;  %v428_v52 = vmax.f32 %v356_v43, %v415_v48 }
  0xf5   : > { %v699_v55 = vpack.c.bf16 %v533_v49, %v533_v49  ;;  %v531_v56 = vmax.f32 %v527_v50, 0.0  ;;  %v500_v57 = vmax.f32 %v428_v52, %v487_v53  ;;  %v530_v58 = vadd.f32 %v525_v54, %v502_v51 }
  0xf7   : > { %554 = vst.msk [vmem:[%s185_s28 + $0x8] sm:$0xf] %vm551_vm3, %v699_v55  ;;  %v697_v60 = vpack.c.bf16 %v531_v56, %v531_v56  ;;  %v534_v61 = vmax.f32 %v530_v58, 0.0  ;;  %v528_v62 = vadd.f32 %v515_v59, %v500_v57 }
  0xf9   : > { %552 = vst.msk [vmem:[%s185_s28] sm:$0xf] %vm551_vm3, %v697_v60  ;;  %v700_v63 = vpack.c.bf16 %v534_v61, %v534_v61  ;;  %v532_v0 = vmax.f32 %v528_v62, 0.0 }
  0xfb   : > { %555 = vst.msk [vmem:[%s185_s28 + $0xc] sm:$0xf] %vm551_vm3, %v700_v63  ;;  %v698_v1 = vpack.c.bf16 %v532_v0, %v532_v0 }
  0xfd   : > { %553 = vst.msk [vmem:[%s185_s28 + $0x4] sm:$0xf] %vm551_vm3, %v698_v1 }
  0xfe   : > { %834 = shalt.err (!%p831_p5)
}
  0xff   : > { %s835_s11 = scalar_lea.hbm %s1022_s6, 256  ;;  %s839_s21 = scalar_lea.hbm %s1075_s3, 512 }
 0x100   : > { %p836_p6 = scmp.ne.s32.totalorder %s1022_s6, %s835_s11  ;;  %p840_p10 = scmp.lt.s32.totalorder %s1022_s6, %s1075_s3 }
 0x101   : > { %p841_p11 = scmp.lt.s32.totalorder %s839_s21, %s835_s11 }
 0x102   : > { %p837_p7 = pnand %p836_p6, %p964_p4 }
 0x103   : > { %p842_p12 = por %p841_p11, %p840_p10 }
 0x104   : > { %p838_p9 = pneg %p837_p7 }
 0x106   : > { %p843_p13 = pnand %p842_p12, %p838_p9 }
 0x108   : > { %846 = shalt.err (!%p843_p13)
}
 0x109   : > { %s902_s27 = smov 64   ;;  %s903_s28 = smov 4  }
 0x10a   : > { %750 = dma.vmem_to_hbm [thread:$0]  (%p964_p4), %s1016_s29, 256, %s1022_s6, %s1027_s15, %s902_s27, %s902_s27, %s903_s28  }
 0x10b PF: > { %p756_p0 = scmp.ge.s32.totalorder %s897_s17, 2  ;;  %s586_s30 = sand.u32 1, %s877_s12  }
 0x10c   : > { %s587_s4 = scalar_lea.sflag [#allocation3], %s586_s30 }
 0x10d   : > { %p753_p1 = pnand %p756_p0, %p971_p8 }
 0x10f   : > { %p754_p2 = pneg %p753_p1 }
 0x111   : > { %872 = dma.done.wait (%p754_p2), %s587_s4, 256  }
 0x112   : > { %874 = vsyncadd (%p754_p2), %s587_s4, 4294967040  ;;  %s16_s17 = sadd.s32 1, %s897_s17   ;;  %s1078_s12 = smov %s881_s13 }
 0x113   : > { %p13_p3 = scmp.ge.s32.totalorder %s16_s17, 4   ;;  %s1079_s13 = smov %s885_s14 }
 0x114   : > { %s1080_s14 = smov %s977_s25  ;;  %s1081_s15 = smov %s893_s16 }
 0x115   : > { %s1082_s16 = smov %s1084_s20  ;;  %15 = sbr.rel (!%p13_p3) target bundleno = 4 (0x4), region = 70 }
 0x11a   :  { %592 = vsyncpa [#allocation3], 1 }
 0x11b   :  { %594 = vsyncpa [#allocation3 + $0x1], 1 }

</bundles_post_ra>
